<compile_context>
chip_gen: v6e
topology: v6e:2x2x1
jax: 0.10.0
libtpu: 0.0.40
codegen_flags: <defaults>
</compile_context>

<pallas_src>
import jax
import jax.numpy as jnp
from jax.experimental import pallas as pl
from jax.experimental.pallas import tpu as pltpu


def fcrnn_kernel(x_ref,                       # (T*Bp, D_in)  bf16, time-major rows
                 wih1_ref,                    # (D_in, Hp)    bf16
                 whh1_ref,                    # (Hp, Hp)      bf16
                 b1_ref,                      # (1, Hp)       f32
                 w2cat_ref,                   # (2*Hp, Hp)    bf16  = [W_ih2; W_hh2]
                 b2_ref,                      # (1, Hp)       f32
                 wfc1_ref, bfc1_ref,          # (Hp, Hp) bf16, (1, Hp) f32
                 wfc2_ref, bfc2_ref,          # (Hp, Op) bf16, (1, Op) f32
                 out_ref):                    # (Bp, Op)      f32
    TB = x_ref.shape[0]
    Bp = out_ref.shape[0]
    Hp = whh1_ref.shape[0]
    T = TB // Bp

    # --- Hoisted layer-1 input projection: one big bf16 matmul, f32 acc, b1 folded in. ---
    xp = (jnp.dot(x_ref[...], wih1_ref[...], preferred_element_type=jnp.float32)
          + b1_ref[...])                               # (T*Bp, Hp) f32

    # Load recurrent weights once (already bf16); hoist the b2 broadcast so it is
    # not re-materialized every unrolled step.
    whh1 = whh1_ref[...]
    w2cat = w2cat_ref[...]
    b2 = jnp.broadcast_to(b2_ref[...], (Bp, Hp))

    h1 = jnp.zeros((Bp, Hp), jnp.float32)
    h2 = jnp.zeros((Bp, Hp), jnp.float32)

    # T is static and small: fully unroll the recurrence (2 MXU dots / step).
    for t in range(T):
        xp_t = xp[t * Bp:(t + 1) * Bp, :]              # static slice, sublane-aligned
        # Layer 1: h1 = tanh(xp_t + h1 @ W_hh1)
        h1 = jnp.tanh(
            xp_t + jnp.dot(h1.astype(jnp.bfloat16), whh1,
                           preferred_element_type=jnp.float32))
        # dropout1 is identity in eval mode.
        # Layer 2 (fused): h2 = tanh([h1, h2] @ [W_ih2; W_hh2] + b2)
        h12 = jnp.concatenate([h1.astype(jnp.bfloat16),
                               h2.astype(jnp.bfloat16)], axis=-1)   # (Bp, 2*Hp)
        h2 = jnp.tanh(
            jnp.dot(h12, w2cat, preferred_element_type=jnp.float32) + b2)

    # dropout2 is identity in eval mode.
    # FC head on the last time step: relu(h2 @ Wfc1 + bfc1) @ Wfc2 + bfc2
    hidden = jnp.maximum(
        jnp.dot(h2.astype(jnp.bfloat16), wfc1_ref[...],
                preferred_element_type=jnp.float32) + bfc1_ref[...], 0.0)
    out = (jnp.dot(hidden.astype(jnp.bfloat16), wfc2_ref[...],
                   preferred_element_type=jnp.float32) + bfc2_ref[...])
    out_ref[...] = out.astype(out_ref.dtype)           # (Bp, Op) dense store


def _pad2(a, rows, cols):
    r, c = a.shape
    return jnp.pad(a, ((0, rows - r), (0, cols - c)))


def _round_up(n, m):
    return ((n + m - 1) // m) * m


def fcrnn_forward(x, params, *, lane=128, sublane=8):
    """x: (B, T, D_in) float32.  Returns (B, output_size) float32."""
    B, T, D_in = x.shape
    H = params["whh1"].shape[0]
    O = params["wfc2"].shape[1]
    Hp = _round_up(H, lane)
    Op = _round_up(O, lane)
    Bp = _round_up(B, sublane)

    bf16 = jnp.bfloat16
    # Zero-pad H/O to lane multiples and B to a sublane multiple (numerically
    # exact for the real rows/lanes), build the fused layer-2 weight once, and
    # cast all matmul weights to bf16 once here (biases stay f32 addends).
    wih1 = _pad2(params["wih1"], D_in, Hp).astype(bf16)
    whh1 = _pad2(params["whh1"], Hp, Hp).astype(bf16)
    b1 = _pad2(params["b1"], 1, Hp)
    w2cat = jnp.concatenate(
        [_pad2(params["wih2"], Hp, Hp), _pad2(params["whh2"], Hp, Hp)],
        axis=0).astype(bf16)
    b2 = _pad2(params["b2"], 1, Hp)
    wfc1 = _pad2(params["wfc1"], Hp, Hp).astype(bf16)
    bfc1 = _pad2(params["bfc1"], 1, Hp)
    wfc2 = _pad2(params["wfc2"], Hp, Op).astype(bf16)
    bfc2 = _pad2(params["bfc2"], 1, Op)

    # Pad batch to Bp, then time-major flatten: rows t*Bp:(t+1)*Bp are step t.
    x_pad = jnp.pad(x, ((0, Bp - B), (0, 0), (0, 0)))
    x2d = jnp.transpose(x_pad, (1, 0, 2)).reshape(T * Bp, D_in).astype(bf16)

    args = (x2d, wih1, whh1, b1, w2cat, b2, wfc1, bfc1, wfc2, bfc2)
    vmem = pl.BlockSpec(memory_space=pltpu.MemorySpace.VMEM)

    flops = (2 * T * Bp * (D_in * Hp + 3 * Hp * Hp)
             + 2 * Bp * (Hp * Hp + Hp * Op))
    transcendentals = 2 * T * Bp * Hp                   # tanh per layer/step
    bytes_accessed = (2 * int(x2d.size)
                      + 2 * sum(int(a.size) for a in (wih1, w2cat, whh1, wfc1, wfc2))
                      + 4 * sum(int(a.size) for a in (b1, b2, bfc1, bfc2))
                      + 4 * Bp * Op)

    out_pad = pl.pallas_call(
        fcrnn_kernel,
        out_shape=jax.ShapeDtypeStruct((Bp, Op), jnp.float32),
        in_specs=[vmem] * len(args),
        out_specs=vmem,
        compiler_params=pltpu.CompilerParams(
            vmem_limit_bytes=32 * 1024 * 1024),
        cost_estimate=pl.CostEstimate(
            flops=flops,
            transcendentals=transcendentals,
            bytes_accessed=bytes_accessed),
    )(*args)
    return out_pad[:B, :O]


def init_params(key, input_size, hidden_size, output_size):
    """Deterministic init mimicking PyTorch's uniform(-1/sqrt(H), 1/sqrt(H))."""
    ks = jax.random.split(key, 11)
    s = 1.0 / jnp.sqrt(hidden_size)

    def u(k, shape):
        return jax.random.uniform(k, shape, jnp.float32, -s, s)

    return {
        # RNN layer 1 (W stored transposed vs. PyTorch; b = b_ih + b_hh fused)
        "wih1": u(ks[0], (input_size, hidden_size)),
        "whh1": u(ks[1], (hidden_size, hidden_size)),
        "b1":   u(ks[2], (1, hidden_size)) + u(ks[3], (1, hidden_size)),
        # RNN layer 2
        "wih2": u(ks[4], (hidden_size, hidden_size)),
        "whh2": u(ks[5], (hidden_size, hidden_size)),
        "b2":   u(ks[6], (1, hidden_size)) + u(ks[7], (1, hidden_size)),
        # FC head
        "wfc1": u(ks[8], (hidden_size, hidden_size)),
        "bfc1": u(ks[9], (1, hidden_size)),
        "wfc2": u(ks[10], (hidden_size, output_size)),
        "bfc2": jnp.zeros((1, output_size), jnp.float32),
    }


def fcrnn_reference(x, p):
    """Pure-JAX f32 reference for correctness checking (eval-mode forward)."""
    B, T, _ = x.shape
    H = p["whh1"].shape[0]
    h1 = jnp.zeros((B, H), jnp.float32)
    h2 = jnp.zeros((B, H), jnp.float32)
    for t in range(T):
        h1 = jnp.tanh(x[:, t, :] @ p["wih1"] + h1 @ p["whh1"] + p["b1"])
        h2 = jnp.tanh(h1 @ p["wih2"] + h2 @ p["whh2"] + p["b2"])
    hidden = jnp.maximum(h2 @ p["wfc1"] + p["bfc1"], 0.0)
    return hidden @ p["wfc2"] + p["bfc2"]


if __name__ == "__main__":
    B, T, D_IN, H, O = 2, 8, 16, 32, 1

    key = jax.random.PRNGKey(0)
    kx, kp = jax.random.split(key)
    x = jax.random.normal(kx, (B, T, D_IN), jnp.float32)
    params = init_params(kp, D_IN, H, O)

    out = fcrnn_forward(x, params)
    out = jax.block_until_ready(out)

    ref = fcrnn_reference(x, params)
    assert out.shape == (B, O)
    # bf16 matmul operands (f32 accumulation) -> loosened tolerance vs f32 reference.
    assert jnp.allclose(out, ref, atol=2e-2, rtol=2e-2), (out, ref)

    print("KERNEL_OK")
</pallas_src>

<mosaic_0001>
module attributes {stable_mosaic.version = 11 : i64} {
  func.func @fcrnn_kernel(%arg0: memref<64x16xbf16, #tpu.memory_space<vmem>>, %arg1: memref<16x128xbf16, #tpu.memory_space<vmem>>, %arg2: memref<128x128xbf16, #tpu.memory_space<vmem>>, %arg3: memref<1x128xf32, #tpu.memory_space<vmem>>, %arg4: memref<256x128xbf16, #tpu.memory_space<vmem>>, %arg5: memref<1x128xf32, #tpu.memory_space<vmem>>, %arg6: memref<128x128xbf16, #tpu.memory_space<vmem>>, %arg7: memref<1x128xf32, #tpu.memory_space<vmem>>, %arg8: memref<128x128xbf16, #tpu.memory_space<vmem>>, %arg9: memref<1x128xf32, #tpu.memory_space<vmem>>, %arg10: memref<8x128xf32, #tpu.memory_space<vmem>>) attributes {dimension_semantics = [], scalar_prefetch = 0 : i64, scratch_operands = 0 : i64, tpu.core_type = #tpu.core_type<tc>} {
    %c0 = arith.constant 0 : index
    %c0_0 = arith.constant 0 : index
    %0 = vector.load %arg0[%c0, %c0_0] : memref<64x16xbf16, #tpu.memory_space<vmem>>, vector<64x16xbf16>
    %c0_1 = arith.constant 0 : index
    %c0_2 = arith.constant 0 : index
    %1 = vector.load %arg1[%c0_1, %c0_2] : memref<16x128xbf16, #tpu.memory_space<vmem>>, vector<16x128xbf16>
    %cst = arith.constant dense<0.000000e+00> : vector<64x128xf32>
    %2 = tpu.matmul %0, %1, %cst {dimension_numbers = #tpu.dot_dimension_numbers<[1], [0], [0], [1], [0, 0, 1, 1], [], []>} : vector<64x16xbf16>, vector<16x128xbf16>, vector<64x128xf32> -> vector<64x128xf32>
    %c0_3 = arith.constant 0 : index
    %c0_4 = arith.constant 0 : index
    %3 = vector.load %arg3[%c0_3, %c0_4] : memref<1x128xf32, #tpu.memory_space<vmem>>, vector<1x128xf32>
    %4 = vector.broadcast %3 : vector<1x128xf32> to vector<64x128xf32>
    %5 = arith.addf %2, %4 : vector<64x128xf32>
    %c0_5 = arith.constant 0 : index
    %c0_6 = arith.constant 0 : index
    %6 = vector.load %arg2[%c0_5, %c0_6] : memref<128x128xbf16, #tpu.memory_space<vmem>>, vector<128x128xbf16>
    %c0_7 = arith.constant 0 : index
    %c0_8 = arith.constant 0 : index
    %7 = vector.load %arg4[%c0_7, %c0_8] : memref<256x128xbf16, #tpu.memory_space<vmem>>, vector<256x128xbf16>
    %c0_9 = arith.constant 0 : index
    %c0_10 = arith.constant 0 : index
    %8 = vector.load %arg5[%c0_9, %c0_10] : memref<1x128xf32, #tpu.memory_space<vmem>>, vector<1x128xf32>
    %9 = vector.shape_cast %8 : vector<1x128xf32> to vector<1x128xf32>
    %10 = vector.broadcast %9 : vector<1x128xf32> to vector<8x128xf32>
    %cst_11 = arith.constant 0.000000e+00 : f32
    %11 = vector.broadcast %cst_11 : f32 to vector<8x128xf32>
    %cst_12 = arith.constant 0.000000e+00 : f32
    %12 = vector.broadcast %cst_12 : f32 to vector<8x128xf32>
    %13 = vector.extract_strided_slice %5 {offsets = [0, 0], sizes = [8, 128], strides = [1, 1]} : vector<64x128xf32> to vector<8x128xf32>
    %14 = arith.truncf %11 : vector<8x128xf32> to vector<8x128xbf16>
    %cst_13 = arith.constant dense<0.000000e+00> : vector<8x128xf32>
    %15 = tpu.matmul %14, %6, %cst_13 {dimension_numbers = #tpu.dot_dimension_numbers<[1], [0], [0], [1], [0, 0, 1, 1], [], []>} : vector<8x128xbf16>, vector<128x128xbf16>, vector<8x128xf32> -> vector<8x128xf32>
    %16 = arith.addf %13, %15 : vector<8x128xf32>
    %17 = math.tanh %16 : vector<8x128xf32>
    %18 = arith.truncf %17 : vector<8x128xf32> to vector<8x128xbf16>
    %19 = arith.truncf %12 : vector<8x128xf32> to vector<8x128xbf16>
    %20 = tpu.concatenate %18, %19 in 1 : vector<8x128xbf16>, vector<8x128xbf16> -> vector<8x256xbf16>
    %cst_14 = arith.constant dense<0.000000e+00> : vector<8x128xf32>
    %21 = tpu.matmul %20, %7, %cst_14 {dimension_numbers = #tpu.dot_dimension_numbers<[1], [0], [0], [1], [0, 0, 1, 1], [], []>} : vector<8x256xbf16>, vector<256x128xbf16>, vector<8x128xf32> -> vector<8x128xf32>
    %22 = arith.addf %21, %10 : vector<8x128xf32>
    %23 = math.tanh %22 : vector<8x128xf32>
    %24 = vector.extract_strided_slice %5 {offsets = [8, 0], sizes = [8, 128], strides = [1, 1]} : vector<64x128xf32> to vector<8x128xf32>
    %25 = arith.truncf %17 : vector<8x128xf32> to vector<8x128xbf16>
    %cst_15 = arith.constant dense<0.000000e+00> : vector<8x128xf32>
    %26 = tpu.matmul %25, %6, %cst_15 {dimension_numbers = #tpu.dot_dimension_numbers<[1], [0], [0], [1], [0, 0, 1, 1], [], []>} : vector<8x128xbf16>, vector<128x128xbf16>, vector<8x128xf32> -> vector<8x128xf32>
    %27 = arith.addf %24, %26 : vector<8x128xf32>
    %28 = math.tanh %27 : vector<8x128xf32>
    %29 = arith.truncf %28 : vector<8x128xf32> to vector<8x128xbf16>
    %30 = arith.truncf %23 : vector<8x128xf32> to vector<8x128xbf16>
    %31 = tpu.concatenate %29, %30 in 1 : vector<8x128xbf16>, vector<8x128xbf16> -> vector<8x256xbf16>
    %cst_16 = arith.constant dense<0.000000e+00> : vector<8x128xf32>
    %32 = tpu.matmul %31, %7, %cst_16 {dimension_numbers = #tpu.dot_dimension_numbers<[1], [0], [0], [1], [0, 0, 1, 1], [], []>} : vector<8x256xbf16>, vector<256x128xbf16>, vector<8x128xf32> -> vector<8x128xf32>
    %33 = arith.addf %32, %10 : vector<8x128xf32>
    %34 = math.tanh %33 : vector<8x128xf32>
    %35 = vector.extract_strided_slice %5 {offsets = [16, 0], sizes = [8, 128], strides = [1, 1]} : vector<64x128xf32> to vector<8x128xf32>
    %36 = arith.truncf %28 : vector<8x128xf32> to vector<8x128xbf16>
    %cst_17 = arith.constant dense<0.000000e+00> : vector<8x128xf32>
    %37 = tpu.matmul %36, %6, %cst_17 {dimension_numbers = #tpu.dot_dimension_numbers<[1], [0], [0], [1], [0, 0, 1, 1], [], []>} : vector<8x128xbf16>, vector<128x128xbf16>, vector<8x128xf32> -> vector<8x128xf32>
    %38 = arith.addf %35, %37 : vector<8x128xf32>
    %39 = math.tanh %38 : vector<8x128xf32>
    %40 = arith.truncf %39 : vector<8x128xf32> to vector<8x128xbf16>
    %41 = arith.truncf %34 : vector<8x128xf32> to vector<8x128xbf16>
    %42 = tpu.concatenate %40, %41 in 1 : vector<8x128xbf16>, vector<8x128xbf16> -> vector<8x256xbf16>
    %cst_18 = arith.constant dense<0.000000e+00> : vector<8x128xf32>
    %43 = tpu.matmul %42, %7, %cst_18 {dimension_numbers = #tpu.dot_dimension_numbers<[1], [0], [0], [1], [0, 0, 1, 1], [], []>} : vector<8x256xbf16>, vector<256x128xbf16>, vector<8x128xf32> -> vector<8x128xf32>
    %44 = arith.addf %43, %10 : vector<8x128xf32>
    %45 = math.tanh %44 : vector<8x128xf32>
    %46 = vector.extract_strided_slice %5 {offsets = [24, 0], sizes = [8, 128], strides = [1, 1]} : vector<64x128xf32> to vector<8x128xf32>
    %47 = arith.truncf %39 : vector<8x128xf32> to vector<8x128xbf16>
    %cst_19 = arith.constant dense<0.000000e+00> : vector<8x128xf32>
    %48 = tpu.matmul %47, %6, %cst_19 {dimension_numbers = #tpu.dot_dimension_numbers<[1], [0], [0], [1], [0, 0, 1, 1], [], []>} : vector<8x128xbf16>, vector<128x128xbf16>, vector<8x128xf32> -> vector<8x128xf32>
    %49 = arith.addf %46, %48 : vector<8x128xf32>
    %50 = math.tanh %49 : vector<8x128xf32>
    %51 = arith.truncf %50 : vector<8x128xf32> to vector<8x128xbf16>
    %52 = arith.truncf %45 : vector<8x128xf32> to vector<8x128xbf16>
    %53 = tpu.concatenate %51, %52 in 1 : vector<8x128xbf16>, vector<8x128xbf16> -> vector<8x256xbf16>
    %cst_20 = arith.constant dense<0.000000e+00> : vector<8x128xf32>
    %54 = tpu.matmul %53, %7, %cst_20 {dimension_numbers = #tpu.dot_dimension_numbers<[1], [0], [0], [1], [0, 0, 1, 1], [], []>} : vector<8x256xbf16>, vector<256x128xbf16>, vector<8x128xf32> -> vector<8x128xf32>
    %55 = arith.addf %54, %10 : vector<8x128xf32>
    %56 = math.tanh %55 : vector<8x128xf32>
    %57 = vector.extract_strided_slice %5 {offsets = [32, 0], sizes = [8, 128], strides = [1, 1]} : vector<64x128xf32> to vector<8x128xf32>
    %58 = arith.truncf %50 : vector<8x128xf32> to vector<8x128xbf16>
    %cst_21 = arith.constant dense<0.000000e+00> : vector<8x128xf32>
    %59 = tpu.matmul %58, %6, %cst_21 {dimension_numbers = #tpu.dot_dimension_numbers<[1], [0], [0], [1], [0, 0, 1, 1], [], []>} : vector<8x128xbf16>, vector<128x128xbf16>, vector<8x128xf32> -> vector<8x128xf32>
    %60 = arith.addf %57, %59 : vector<8x128xf32>
    %61 = math.tanh %60 : vector<8x128xf32>
    %62 = arith.truncf %61 : vector<8x128xf32> to vector<8x128xbf16>
    %63 = arith.truncf %56 : vector<8x128xf32> to vector<8x128xbf16>
    %64 = tpu.concatenate %62, %63 in 1 : vector<8x128xbf16>, vector<8x128xbf16> -> vector<8x256xbf16>
    %cst_22 = arith.constant dense<0.000000e+00> : vector<8x128xf32>
    %65 = tpu.matmul %64, %7, %cst_22 {dimension_numbers = #tpu.dot_dimension_numbers<[1], [0], [0], [1], [0, 0, 1, 1], [], []>} : vector<8x256xbf16>, vector<256x128xbf16>, vector<8x128xf32> -> vector<8x128xf32>
    %66 = arith.addf %65, %10 : vector<8x128xf32>
    %67 = math.tanh %66 : vector<8x128xf32>
    %68 = vector.extract_strided_slice %5 {offsets = [40, 0], sizes = [8, 128], strides = [1, 1]} : vector<64x128xf32> to vector<8x128xf32>
    %69 = arith.truncf %61 : vector<8x128xf32> to vector<8x128xbf16>
    %cst_23 = arith.constant dense<0.000000e+00> : vector<8x128xf32>
    %70 = tpu.matmul %69, %6, %cst_23 {dimension_numbers = #tpu.dot_dimension_numbers<[1], [0], [0], [1], [0, 0, 1, 1], [], []>} : vector<8x128xbf16>, vector<128x128xbf16>, vector<8x128xf32> -> vector<8x128xf32>
    %71 = arith.addf %68, %70 : vector<8x128xf32>
    %72 = math.tanh %71 : vector<8x128xf32>
    %73 = arith.truncf %72 : vector<8x128xf32> to vector<8x128xbf16>
    %74 = arith.truncf %67 : vector<8x128xf32> to vector<8x128xbf16>
    %75 = tpu.concatenate %73, %74 in 1 : vector<8x128xbf16>, vector<8x128xbf16> -> vector<8x256xbf16>
    %cst_24 = arith.constant dense<0.000000e+00> : vector<8x128xf32>
    %76 = tpu.matmul %75, %7, %cst_24 {dimension_numbers = #tpu.dot_dimension_numbers<[1], [0], [0], [1], [0, 0, 1, 1], [], []>} : vector<8x256xbf16>, vector<256x128xbf16>, vector<8x128xf32> -> vector<8x128xf32>
    %77 = arith.addf %76, %10 : vector<8x128xf32>
    %78 = math.tanh %77 : vector<8x128xf32>
    %79 = vector.extract_strided_slice %5 {offsets = [48, 0], sizes = [8, 128], strides = [1, 1]} : vector<64x128xf32> to vector<8x128xf32>
    %80 = arith.truncf %72 : vector<8x128xf32> to vector<8x128xbf16>
    %cst_25 = arith.constant dense<0.000000e+00> : vector<8x128xf32>
    %81 = tpu.matmul %80, %6, %cst_25 {dimension_numbers = #tpu.dot_dimension_numbers<[1], [0], [0], [1], [0, 0, 1, 1], [], []>} : vector<8x128xbf16>, vector<128x128xbf16>, vector<8x128xf32> -> vector<8x128xf32>
    %82 = arith.addf %79, %81 : vector<8x128xf32>
    %83 = math.tanh %82 : vector<8x128xf32>
    %84 = arith.truncf %83 : vector<8x128xf32> to vector<8x128xbf16>
    %85 = arith.truncf %78 : vector<8x128xf32> to vector<8x128xbf16>
    %86 = tpu.concatenate %84, %85 in 1 : vector<8x128xbf16>, vector<8x128xbf16> -> vector<8x256xbf16>
    %cst_26 = arith.constant dense<0.000000e+00> : vector<8x128xf32>
    %87 = tpu.matmul %86, %7, %cst_26 {dimension_numbers = #tpu.dot_dimension_numbers<[1], [0], [0], [1], [0, 0, 1, 1], [], []>} : vector<8x256xbf16>, vector<256x128xbf16>, vector<8x128xf32> -> vector<8x128xf32>
    %88 = arith.addf %87, %10 : vector<8x128xf32>
    %89 = math.tanh %88 : vector<8x128xf32>
    %90 = vector.extract_strided_slice %5 {offsets = [56, 0], sizes = [8, 128], strides = [1, 1]} : vector<64x128xf32> to vector<8x128xf32>
    %91 = arith.truncf %83 : vector<8x128xf32> to vector<8x128xbf16>
    %cst_27 = arith.constant dense<0.000000e+00> : vector<8x128xf32>
    %92 = tpu.matmul %91, %6, %cst_27 {dimension_numbers = #tpu.dot_dimension_numbers<[1], [0], [0], [1], [0, 0, 1, 1], [], []>} : vector<8x128xbf16>, vector<128x128xbf16>, vector<8x128xf32> -> vector<8x128xf32>
    %93 = arith.addf %90, %92 : vector<8x128xf32>
    %94 = math.tanh %93 : vector<8x128xf32>
    %95 = arith.truncf %94 : vector<8x128xf32> to vector<8x128xbf16>
    %96 = arith.truncf %89 : vector<8x128xf32> to vector<8x128xbf16>
    %97 = tpu.concatenate %95, %96 in 1 : vector<8x128xbf16>, vector<8x128xbf16> -> vector<8x256xbf16>
    %cst_28 = arith.constant dense<0.000000e+00> : vector<8x128xf32>
    %98 = tpu.matmul %97, %7, %cst_28 {dimension_numbers = #tpu.dot_dimension_numbers<[1], [0], [0], [1], [0, 0, 1, 1], [], []>} : vector<8x256xbf16>, vector<256x128xbf16>, vector<8x128xf32> -> vector<8x128xf32>
    %99 = arith.addf %98, %10 : vector<8x128xf32>
    %100 = math.tanh %99 : vector<8x128xf32>
    %101 = arith.truncf %100 : vector<8x128xf32> to vector<8x128xbf16>
    %c0_29 = arith.constant 0 : index
    %c0_30 = arith.constant 0 : index
    %102 = vector.load %arg6[%c0_29, %c0_30] : memref<128x128xbf16, #tpu.memory_space<vmem>>, vector<128x128xbf16>
    %cst_31 = arith.constant dense<0.000000e+00> : vector<8x128xf32>
    %103 = tpu.matmul %101, %102, %cst_31 {dimension_numbers = #tpu.dot_dimension_numbers<[1], [0], [0], [1], [0, 0, 1, 1], [], []>} : vector<8x128xbf16>, vector<128x128xbf16>, vector<8x128xf32> -> vector<8x128xf32>
    %c0_32 = arith.constant 0 : index
    %c0_33 = arith.constant 0 : index
    %104 = vector.load %arg7[%c0_32, %c0_33] : memref<1x128xf32, #tpu.memory_space<vmem>>, vector<1x128xf32>
    %105 = vector.broadcast %104 : vector<1x128xf32> to vector<8x128xf32>
    %106 = arith.addf %103, %105 : vector<8x128xf32>
    %cst_34 = arith.constant 0.000000e+00 : f32
    %107 = vector.broadcast %cst_34 : f32 to vector<8x128xf32>
    %108 = arith.maximumf %106, %107 : vector<8x128xf32>
    %109 = arith.truncf %108 : vector<8x128xf32> to vector<8x128xbf16>
    %c0_35 = arith.constant 0 : index
    %c0_36 = arith.constant 0 : index
    %110 = vector.load %arg8[%c0_35, %c0_36] : memref<128x128xbf16, #tpu.memory_space<vmem>>, vector<128x128xbf16>
    %cst_37 = arith.constant dense<0.000000e+00> : vector<8x128xf32>
    %111 = tpu.matmul %109, %110, %cst_37 {dimension_numbers = #tpu.dot_dimension_numbers<[1], [0], [0], [1], [0, 0, 1, 1], [], []>} : vector<8x128xbf16>, vector<128x128xbf16>, vector<8x128xf32> -> vector<8x128xf32>
    %c0_38 = arith.constant 0 : index
    %c0_39 = arith.constant 0 : index
    %112 = vector.load %arg9[%c0_38, %c0_39] : memref<1x128xf32, #tpu.memory_space<vmem>>, vector<1x128xf32>
    %113 = vector.broadcast %112 : vector<1x128xf32> to vector<8x128xf32>
    %114 = arith.addf %111, %113 : vector<8x128xf32>
    %c0_40 = arith.constant 0 : index
    %c0_41 = arith.constant 0 : index
    %115 = vector.load %arg10[%c0_40, %c0_41] : memref<8x128xf32, #tpu.memory_space<vmem>>, vector<8x128xf32>
    tpu.vector_store %arg10[%c0_40, %c0_41], %114 {strides = array<i32>} : memref<8x128xf32, #tpu.memory_space<vmem>>, vector<8x128xf32>,
    return
  }
}

</mosaic_0001>

<bundles_post_ra>
// kernel: tpu_custom_call.1
= control target key start
LH: loop header
LB: loop body
LE: loop exit
PB: predicated region body
PF: predicated region fallthrough
CT: control target
= control target key end

     0   :  { %15 = vsyncpa [#allocation3], 0  ;;  %s2564_s0 = inlined_call_operand.vmem [shape: bf16[64,16], index: 0, kind: input, shape index: {}]   ;;  %s2565_s1 = inlined_call_operand.vmem [shape: bf16[16,128], index: 1, kind: input, shape index: {}]   ;;  %s2566_s2 = inlined_call_operand.hbm [shape: bf16[128,128], index: 2, kind: input, shape index: {}]   ;;  %s2567_s3 = inlined_call_operand.vmem [shape: f32[1,128], index: 3, kind: input, shape index: {}]   ;;  %s2568_s4 = inlined_call_operand.hbm [shape: bf16[256,128], index: 4, kind: input, shape index: {}]   ;;  %s2569_s5 = inlined_call_operand.vmem [shape: f32[1,128], index: 5, kind: input, shape index: {}]   ;;  %s2570_s6 = inlined_call_operand.hbm [shape: bf16[128,128], index: 6, kind: input, shape index: {}]   ;;  %s2571_s7 = inlined_call_operand.vmem [shape: f32[1,128], index: 7, kind: input, shape index: {}]   ;;  %s2572_s8 = inlined_call_operand.hbm [shape: bf16[128,128], index: 8, kind: input, shape index: {}]   ;;  %s2573_s9 = inlined_call_operand.vmem [shape: f32[1,128], index: 9, kind: input, shape index: {}]   ;;  %s2574_s10 = inlined_call_operand.hbm [shape: f32[8,128], index: 10, kind: output, shape index: {}]  }
   0x1   :  { %16 = vsyncpa [#allocation6], 0 }
   0x2   :  { %17 = vsyncpa [#allocation9], 0 }
   0x3   :  { %18 = vsyncpa [#allocation4], 0  ;;  %s2063_s13 = smov [#allocation5]   ;;  %s2064_s15 = smov [#allocation2]  }
   0x4   :  { %s42_s14 = sshll.u32 %s2063_s13, 4  ;;  %s28_s16 = sshll.u32 %s2064_s15, 4  ;;  %s43_s14 = int_to_ptr.vmem [resolvable:$true] %s42_s14  ;;  %s29_s16 = int_to_ptr.vmem [resolvable:$true] %s28_s16 }
   0x5   :  { %s1963_s17 = scalar_lea.vmem %s43_s14, 2048  ;;  %p1968_p1 = scmp.lt.s32.totalorder %s43_s14, %s43_s14 }
   0x6   :  { %p1964_p0 = scmp.ne.s32.totalorder %s43_s14, %s1963_s17  ;;  %p1969_p2 = scmp.lt.s32.totalorder %s1963_s17, %s1963_s17 }
   0x8   :  { %p1970_p3 = por %p1969_p2, %p1968_p1 }
   0xa   :  { %p1971_p4 = pnand %p1970_p3, %p1964_p0 }
   0xc   :  { %1974 = shalt.err (!%p1971_p4)
}
   0xd   :  { %s2065_s18 = smov 64   ;;  %s2066_s19 = smov 4  }
   0xe   :  { %48 = dma.hbm_to_vmem [thread:$0]  %s2568_s4, 2048, %s43_s14, [#allocation6], %s2065_s18, %s2065_s18, %s2066_s19  }
   0xf   :  { %s1983_s22 = scalar_lea.vmem %s29_s16, 1024  ;;  %p1988_p6 = scmp.lt.s32.totalorder %s29_s16, %s29_s16 }
  0x10   :  { %p1984_p5 = scmp.ne.s32.totalorder %s29_s16, %s1983_s22  ;;  %p1989_p7 = scmp.lt.s32.totalorder %s1983_s22, %s1983_s22 }
  0x12   :  { %p1990_p8 = por %p1989_p7, %p1988_p6 }
  0x14   :  { %p1991_p9 = pnand %p1990_p8, %p1984_p5 }
  0x16   :  { %1994 = shalt.err (!%p1991_p9)
}
  0x17   :  { %34 = dma.hbm_to_vmem [thread:$0]  %s2566_s2, 1024, %s29_s16, [#allocation3], %s2065_s18, %s2065_s18, %s2066_s19  }
  0x18   :  { %s2067_s25 = smov [#allocation7]   ;;  %s2068_s27 = smov [#allocation8]  }
  0x19   :  { %s56_s26 = sshll.u32 %s2067_s25, 4  ;;  %s70_s28 = sshll.u32 %s2068_s27, 4  ;;  %s57_s26 = int_to_ptr.vmem [resolvable:$true] %s56_s26  ;;  %s71_s28 = int_to_ptr.vmem [resolvable:$true] %s70_s28 }
  0x1a   :  { %s2003_s4 = scalar_lea.vmem %s57_s26, 1024  ;;  %p2008_p11 = scmp.lt.s32.totalorder %s57_s26, %s57_s26 }
  0x1b   :  { %p2004_p10 = scmp.ne.s32.totalorder %s57_s26, %s2003_s4  ;;  %p2009_p12 = scmp.lt.s32.totalorder %s2003_s4, %s2003_s4 }
  0x1d   :  { %p2010_p13 = por %p2009_p12, %p2008_p11 }
  0x1f   :  { %p2011_p0 = pnand %p2010_p13, %p2004_p10 }
  0x21   :  { %2014 = shalt.err (!%p2011_p0)
}
  0x22   :  { %62 = dma.hbm_to_vmem [thread:$0]  %s2570_s6, 1024, %s57_s26, [#allocation6], %s2065_s18, %s2065_s18, %s2066_s19  }
  0x23   :  { %s2023_s2 = scalar_lea.vmem %s71_s28, 1024  ;;  %p2028_p2 = scmp.lt.s32.totalorder %s71_s28, %s71_s28 }
  0x24   :  { %p2024_p1 = scmp.ne.s32.totalorder %s71_s28, %s2023_s2  ;;  %p2029_p3 = scmp.lt.s32.totalorder %s2023_s2, %s2023_s2 }
  0x26   :  { %p2030_p4 = por %p2029_p3, %p2028_p2 }
  0x28   :  { %p2031_p5 = pnand %p2030_p4, %p2024_p1 }
  0x2a   :  { %2034 = shalt.err (!%p2031_p5)
}
  0x2b   :  { %76 = dma.hbm_to_vmem [thread:$0]  %s2572_s8, 1024, %s71_s28, [#allocation9], %s2065_s18, %s2065_s18, %s2066_s19  }
  0x2c   :  { %2055 = dma.done.wait [#allocation3], 1024  }
  0x2d   :  { %2056 = vsyncadd [#allocation3], 4294966272 }
  0x2e   :  { %2057 = dma.done.wait [#allocation6], 3072  }
  0x2f   :  { %2058 = vsyncadd [#allocation6], 4294964224 }
  0x30   :  { %2059 = dma.done.wait [#allocation9], 1024  }
  0x31   :  { %2060 = vsyncadd [#allocation9], 4294966272  ;;  %v2069_v0 = vmov 0.0   ;;  %vm2070_vm0 = vmmov 0   ;;  %v2155_v1 = vld [vmem:[#allocation2 + $0x38] sm:$0xff]   ;;  %v2158_v2 = vld [vmem:[#allocation2 + $0x30] sm:$0xff]  }
  0x32   :  { %1668 = vmatprep.subr.bf16.mxu1 %v2069_v0  ;;  %1684 = vmatprep.mubr.msk.bf16.mxu1 %vm2070_vm0, %v2069_v0  ;;  %v2161_v3 = vld [vmem:[#allocation2 + $0x28] sm:$0xff]   ;;  %v1883_v4 = vld [vmem:[%s2565_s1] sm:$0xff]   ;;  %vm135_vm1 = vcmask 130048   ;;  %v2180_v8 = vld [vmem:[#allocation5 + $0x78] sm:$0xff]   ;;  %v2071_v14 = vmov 0   ;;  %s2072_s25 = smov [#allocation10]  }
  0x33   :  { %1669 = vmatpush3.bf16.msra.mxu1 %v2155_v1  ;;  %v1884_v5 = vld [vmem:[%s2564_s0] sm:$0xff]   ;;  %1658 = vmatprep.subr.bf16.mxu0 %v1883_v4  ;;  %v1886_v6 = vld [vmem:[%s2564_s0 + $0x8] sm:$0xff]   ;;  %v2182_v9 = vld [vmem:[#allocation2 + $0x18] sm:$0xff]   ;;  %s1323_s26 = sshll.u32 %s2072_s25, 4  ;;  %s1324_s26 = int_to_ptr.vmem [resolvable:$true] %s1323_s26 }
  0x34   :  { %1670 = vmatprep.subr.bf16.mxu1 %v2069_v0  ;;  %1659 = vmatpush3.bf16.msra.mxu0 %v1883_v4  ;;  %v2176_v7 = vld [vmem:[#allocation2 + $0x20] sm:$0xff]   ;;  %v2184_v10 = vld [vmem:[#allocation5 + $0x38] sm:$0xff]   ;;  %v2190_v11 = vld [vmem:[#allocation2 + $0x10] sm:$0xff]   ;;  %p2040_p7 = scmp.lt.s32.totalorder %s1324_s26, %s1324_s26 }
  0x35   :  { %1660 = vmatprep.mubr.msk.bf16.mxu0 %vm135_vm1, %v1884_v5  ;;  %1401 = vmatprep.subr.bf16.mxu0 %v2180_v8  ;;  %v2194_v12 = vld [vmem:[#allocation2 + $0x8] sm:$0xff]   ;;  %v2198_v13 = vld [vmem:[#allocation2] sm:$0xff]   ;;  %v2222_v15 = vld [vmem:[#allocation5 + $0x70] sm:$0xff]  }
  0x36   :  { %v2225_v16 = vld [vmem:[#allocation5 + $0x30] sm:$0xff]   ;;  %v2228_v17 = vld [vmem:[#allocation5 + $0x68] sm:$0xff]   ;;  %v2233_v19 = vld [vmem:[#allocation5 + $0x60] sm:$0xff]  }
  0x37   :  { %1671 = vmatpush3.bf16.msra.mxu1 %v2158_v2  ;;  %1661 = vmatmul.mubr.msk.bf16.vlgmr.msra.gmra.mxu0 %vm135_vm1, %v1886_v6  ;;  %v2231_v18 = vld [vmem:[#allocation5 + $0x28] sm:$0xff]   ;;  %v2237_v20 = vld [vmem:[#allocation5 + $0x20] sm:$0xff]   ;;  %v2240_v21 = vld [vmem:[#allocation5 + $0x58] sm:$0xff]  }
  0x38   :  { %1672 = vmatprep.subr.bf16.mxu1 %v2069_v0  ;;  %1402 = vmatpush3.bf16.msra.mxu0 %v2184_v10  ;;  %v1898_v22 = vld [vmem:[%s2564_s0 + $0x10] sm:$0xff]   ;;  %v2245_v23 = vld [vmem:[#allocation5 + $0x18] sm:$0xff]   ;;  %v2260_v27 = vld [vmem:[#allocation5 + $0x48] sm:$0xff]  }
  0x39   :  { %1403 = vmatprep.subr.bf16.mxu0 %v2222_v15  ;;  %v1900_v24 = vld [vmem:[%s2564_s0 + $0x18] sm:$0xff]   ;;  %1664 = vmatprep.mubr.msk.bf16.mxu0 %vm135_vm1, %v1898_v22  ;;  %v2254_v25 = vld [vmem:[#allocation5 + $0x50] sm:$0xff]   ;;  %v2262_v28 = vld [vmem:[#allocation5 + $0x8] sm:$0xff]  }
  0x3a   :  { %v2256_v26 = vld [vmem:[#allocation5 + $0x10] sm:$0xff]   ;;  %v2266_v29 = vld [vmem:[#allocation5 + $0x40] sm:$0xff]  }
  0x3b   :  { %1673 = vmatpush3.bf16.msra.mxu1 %v2161_v3  ;;  %v2268_v30 = vld [vmem:[#allocation5] sm:$0xff]  }
  0x3c   :  { %1674 = vmatprep.subr.bf16.mxu1 %v2069_v0  ;;  %1404 = vmatpush3.bf16.msra.mxu0 %v2225_v16  ;;  %v2278_v32 = vld [vmem:[%s2567_s3] ss:$0 sm:$0xff] }
  0x3d   :  { %1405 = vmatprep.subr.bf16.mxu0 %v2228_v17  ;;  %v2329_v52 = vld [vmem:[%s2569_s5] ss:$0 sm:$0xff] }
  0x3f   :  { %1675 = vmatpush3.bf16.msra.mxu1 %v2176_v7  ;;  %1665 = vmatmul.mubr.msk.bf16.gmra.mxu0 %vm135_vm1, %v1900_v24 }
  0x40   :  { %1676 = vmatprep.subr.bf16.mxu1 %v2069_v0  ;;  %1406 = vmatpush3.bf16.msra.mxu0 %v2231_v18 }
  0x41   :  { %1407 = vmatprep.subr.bf16.mxu0 %v2233_v19  ;;  %487 = vmatprep.mubr.bf16.mxu0 %v2071_v14 }
  0x43   :  { %1677 = vmatpush3.bf16.msra.mxu1 %v2182_v9 }
  0x44   :  { %1678 = vmatprep.subr.bf16.mxu1 %v2069_v0  ;;  %1408 = vmatpush3.bf16.msra.mxu0 %v2237_v20 }
  0x45   :  { %1409 = vmatprep.subr.bf16.mxu0 %v2240_v21 }
  0x47   :  { %1679 = vmatpush3.bf16.msra.mxu1 %v2190_v11 }
  0x48   :  { %1680 = vmatprep.subr.bf16.mxu1 %v2069_v0  ;;  %1410 = vmatpush3.bf16.msra.mxu0 %v2245_v23 }
  0x49   :  { %1411 = vmatprep.subr.bf16.mxu0 %v2254_v25 }
  0x4b   :  { %1681 = vmatpush3.bf16.msra.mxu1 %v2194_v12 }
  0x4c   :  { %1682 = vmatprep.subr.bf16.mxu1 %v2069_v0  ;;  %1412 = vmatpush3.bf16.msra.mxu0 %v2256_v26 }
  0x4d   :  { %1413 = vmatprep.subr.bf16.mxu0 %v2260_v27 }
  0x4f   :  { %1683 = vmatpush3.bf16.msra.mxu1 %v2198_v13 }
  0x50   :  { %1688 = vmatprep.subr.bf16.mxu1 %v2069_v0  ;;  %1414 = vmatpush3.bf16.msra.mxu0 %v2262_v28 }
  0x51   :  { %1415 = vmatprep.subr.bf16.mxu0 %v2266_v29 }
  0x52   :  { %1685 = vmatmul.mubr.bf16.vlgmr.msra.gmra.mxu1 %v2071_v14 }
  0x53   :  { %1689 = vmatpush3.bf16.msra.mxu1 %v2155_v1  ;;  %1704 = vmatprep.mubr.msk.bf16.mxu1 %vm2070_vm0, %v2069_v0 }
  0x54   :  { %1690 = vmatprep.subr.bf16.mxu1 %v2069_v0  ;;  %1416 = vmatpush3.bf16.msra.mxu0 %v2268_v30 }
  0x55   :  { %1432 = vmatprep.subr.bf16.mxu0 %v2180_v8 }
  0x57   :  { %1691 = vmatpush3.bf16.msra.mxu1 %v2158_v2 }
  0x58   :  { %1692 = vmatprep.subr.bf16.mxu1 %v2069_v0 }
  0x5b   :  { %1693 = vmatpush3.bf16.msra.mxu1 %v2161_v3 }
  0x5c   :  { %1694 = vmatprep.subr.bf16.mxu1 %v2069_v0 }
  0x5f   :  { %1695 = vmatpush3.bf16.msra.mxu1 %v2176_v7 }
  0x60   :  { %1696 = vmatprep.subr.bf16.mxu1 %v2069_v0 }
  0x63   :  { %1697 = vmatpush3.bf16.msra.mxu1 %v2182_v9 }
  0x64   :  { %1698 = vmatprep.subr.bf16.mxu1 %v2069_v0 }
  0x67   :  { %1699 = vmatpush3.bf16.msra.mxu1 %v2190_v11 }
  0x68   :  { %1700 = vmatprep.subr.bf16.mxu1 %v2069_v0 }
  0x6b   :  { %1701 = vmatpush3.bf16.msra.mxu1 %v2194_v12 }
  0x6c   :  { %1702 = vmatprep.subr.bf16.mxu1 %v2069_v0 }
  0x6f   :  { %1703 = vmatpush3.bf16.msra.mxu1 %v2198_v13 }
  0x70   :  { %1708 = vmatprep.subr.bf16.mxu1 %v2069_v0 }
  0xf7   :  { %v2273_v31 = vpop.f32.mrf.mxu0 }
  0xf8   :  { %v191_v5 = vadd.f32 %v2273_v31, %v2278_v32 }
  0xf9   :  { %v182_v33 = vpop.f32.mrf.mxu0 }
  0xfa   :  { %v183_v34 = vadd.f32 %v2278_v32, %v182_v33 }
  0xfb   :  { %v2315_v42 = vpop.f32.mrf.mxu0 }
  0xfd   :  { %v185_v43 = vpop.f32.mrf.mxu0 }
  0xfe   :  { %v186_v48 = vadd.f32 %v2278_v32, %v185_v43 }
  0xff   :  { %v2317_v44 = vpop.f32.mrf.mxu0 }
 0x101   :  { %v2319_v45 = vpop.f32.mrf.mxu0 }
 0x103   :  { %v2321_v46 = vpop.f32.mrf.mxu0 }
 0x105   :  { %v2323_v47 = vpop.f32.mrf.mxu0 }
 0x112   :  { %v350_v35 = vpop.f32.mrf.mxu1 }
 0x113   :  { %v356_v36 = vadd.f32 %v350_v35, %v183_v34 }
 0x114   :  { %v1686_v37 = vpop.f32.mrf.mxu1 }
 0x115   :  { %1923 = vtanh.f32 %v356_v36 }
 0x116   :  { %v353_v38 = vpop.f32.mrf.mxu1 }
 0x118   :  { %v1687_v39 = vpop.f32.mrf.mxu1 }
 0x122   :  { %v1924_v40 = vpop.eup %1923 }
 0x123   :  { %v358_v41 = vpack.c.bf16 %v1924_v40, %v1924_v40 }
 0x125   :  { %488 = vmatmul.mubr.bf16.vlgmr.msra.gmra.mxu0 %v358_v41  ;;  %1705 = vmatmul.mubr.bf16.vlgmr.msra.gmra.mxu1 %v358_v41 }
 0x126   :  { %1709 = vmatpush3.bf16.msra.mxu1 %v2155_v1  ;;  %1433 = vmatpush3.bf16.msra.mxu0 %v2184_v10 }
 0x127   :  { %1710 = vmatprep.subr.bf16.mxu1 %v2069_v0  ;;  %1434 = vmatprep.subr.bf16.mxu0 %v2222_v15 }
 0x128   :  { %1724 = vmatprep.mubr.msk.bf16.mxu1 %vm2070_vm0, %v2069_v0 }
 0x12a   :  { %1711 = vmatpush3.bf16.msra.mxu1 %v2158_v2  ;;  %1435 = vmatpush3.bf16.msra.mxu0 %v2225_v16 }
 0x12b   :  { %1712 = vmatprep.subr.bf16.mxu1 %v2069_v0  ;;  %1436 = vmatprep.subr.bf16.mxu0 %v2228_v17 }
 0x12e   :  { %1713 = vmatpush3.bf16.msra.mxu1 %v2161_v3  ;;  %1437 = vmatpush3.bf16.msra.mxu0 %v2231_v18 }
 0x12f   :  { %1714 = vmatprep.subr.bf16.mxu1 %v2069_v0  ;;  %1438 = vmatprep.subr.bf16.mxu0 %v2233_v19 }
 0x132   :  { %1715 = vmatpush3.bf16.msra.mxu1 %v2176_v7  ;;  %1439 = vmatpush3.bf16.msra.mxu0 %v2237_v20 }
 0x133   :  { %1716 = vmatprep.subr.bf16.mxu1 %v2069_v0  ;;  %1440 = vmatprep.subr.bf16.mxu0 %v2240_v21 }
 0x136   :  { %1717 = vmatpush3.bf16.msra.mxu1 %v2182_v9  ;;  %1441 = vmatpush3.bf16.msra.mxu0 %v2245_v23 }
 0x137   :  { %1718 = vmatprep.subr.bf16.mxu1 %v2069_v0  ;;  %1442 = vmatprep.subr.bf16.mxu0 %v2254_v25 }
 0x13a   :  { %1719 = vmatpush3.bf16.msra.mxu1 %v2190_v11  ;;  %1443 = vmatpush3.bf16.msra.mxu0 %v2256_v26 }
 0x13b   :  { %1720 = vmatprep.subr.bf16.mxu1 %v2069_v0  ;;  %1444 = vmatprep.subr.bf16.mxu0 %v2260_v27 }
 0x13e   :  { %1721 = vmatpush3.bf16.msra.mxu1 %v2194_v12  ;;  %1445 = vmatpush3.bf16.msra.mxu0 %v2262_v28 }
 0x13f   :  { %1722 = vmatprep.subr.bf16.mxu1 %v2069_v0  ;;  %1446 = vmatprep.subr.bf16.mxu0 %v2266_v29 }
 0x142   :  { %1723 = vmatpush3.bf16.msra.mxu1 %v2198_v13  ;;  %1447 = vmatpush3.bf16.msra.mxu0 %v2268_v30 }
 0x143   :  { %1728 = vmatprep.subr.bf16.mxu1 %v2069_v0  ;;  %1463 = vmatprep.subr.bf16.mxu0 %v2180_v8 }
 0x1e5   :  { %v1417_v49 = vpop.f32.mrf.mxu0  ;;  %v530_v50 = vpop.f32.mrf.mxu1 }
 0x1e6   :  { %v536_v51 = vadd.f32 %v530_v50, %v186_v48  ;;  %v194_v48 = vadd.f32 %v2315_v42, %v2278_v32 }
 0x1e7   :  { %v1418_v53 = vpop.f32.mrf.mxu0  ;;  %v1706_v54 = vpop.f32.mrf.mxu1 }
 0x1e8   :  { %1925 = vtanh.f32 %v536_v51  ;;  %v1419_v55 = vadd.f32 %v1418_v53, %v1417_v49 }
 0x1e9   :  { %v1420_v56 = vpop.f32.mrf.mxu0  ;;  %v533_v57 = vpop.f32.mrf.mxu1 }
 0x1ea   :  { %v490_v58 = vadd.f32 %v1419_v55, %v2329_v52 }
 0x1eb   :  { %v1421_v59 = vpop.f32.mrf.mxu0  ;;  %v1707_v60 = vpop.f32.mrf.mxu1 }
 0x1ec   :  { %1927 = vtanh.f32 %v490_v58 }
 0x1f5   :  { %v1926_v61 = vpop.eup %1925 }
 0x1f6   :  { %v538_v62 = vpack.c.bf16 %v1926_v61, %v1926_v61 }
 0x1f8   :  { %1725 = vmatmul.mubr.bf16.vlgmr.msra.gmra.mxu1 %v538_v62 }
 0x1f9   :  { %v1928_v63 = vpop.eup %1927  ;;  %1729 = vmatpush3.bf16.msra.mxu1 %v2155_v1  ;;  %1744 = vmatprep.mubr.msk.bf16.mxu1 %vm2070_vm0, %v2069_v0 }
 0x1fa   :  { %v539_v4 = vpack.c.bf16 %v1928_v63, %v1928_v63  ;;  %1730 = vmatprep.subr.bf16.mxu1 %v2069_v0 }
 0x1fc   :  { %572 = vmatprep.mubr.bf16.mxu0 %v539_v4  ;;  %v199_v4 = vadd.f32 %v2278_v32, %v2319_v45 }
 0x1fd   :  { %573 = vmatmul.mubr.bf16.vlgmr.msra.gmra.mxu0 %v538_v62  ;;  %1731 = vmatpush3.bf16.msra.mxu1 %v2158_v2 }
 0x1fe   :  { %1732 = vmatprep.subr.bf16.mxu1 %v2069_v0  ;;  %1464 = vmatpush3.bf16.msra.mxu0 %v2184_v10 }
 0x1ff   :  { %1465 = vmatprep.subr.bf16.mxu0 %v2222_v15 }
 0x201   :  { %1733 = vmatpush3.bf16.msra.mxu1 %v2161_v3 }
 0x202   :  { %1734 = vmatprep.subr.bf16.mxu1 %v2069_v0  ;;  %1466 = vmatpush3.bf16.msra.mxu0 %v2225_v16 }
 0x203   :  { %1467 = vmatprep.subr.bf16.mxu0 %v2228_v17 }
 0x205   :  { %1735 = vmatpush3.bf16.msra.mxu1 %v2176_v7 }
 0x206   :  { %1736 = vmatprep.subr.bf16.mxu1 %v2069_v0  ;;  %1468 = vmatpush3.bf16.msra.mxu0 %v2231_v18 }
 0x207   :  { %1469 = vmatprep.subr.bf16.mxu0 %v2233_v19 }
 0x209   :  { %1737 = vmatpush3.bf16.msra.mxu1 %v2182_v9 }
 0x20a   :  { %1738 = vmatprep.subr.bf16.mxu1 %v2069_v0  ;;  %1470 = vmatpush3.bf16.msra.mxu0 %v2237_v20 }
 0x20b   :  { %1471 = vmatprep.subr.bf16.mxu0 %v2240_v21 }
 0x20d   :  { %1739 = vmatpush3.bf16.msra.mxu1 %v2190_v11 }
 0x20e   :  { %1740 = vmatprep.subr.bf16.mxu1 %v2069_v0  ;;  %1472 = vmatpush3.bf16.msra.mxu0 %v2245_v23 }
 0x20f   :  { %1473 = vmatprep.subr.bf16.mxu0 %v2254_v25 }
 0x211   :  { %1741 = vmatpush3.bf16.msra.mxu1 %v2194_v12 }
 0x212   :  { %1742 = vmatprep.subr.bf16.mxu1 %v2069_v0  ;;  %1474 = vmatpush3.bf16.msra.mxu0 %v2256_v26 }
 0x213   :  { %1475 = vmatprep.subr.bf16.mxu0 %v2260_v27 }
 0x215   :  { %1743 = vmatpush3.bf16.msra.mxu1 %v2198_v13 }
 0x216   :  { %1476 = vmatpush3.bf16.msra.mxu0 %v2262_v28  ;;  %1748 = vmatprep.subr.bf16.mxu1 %v2069_v0 }
 0x217   :  { %1477 = vmatprep.subr.bf16.mxu0 %v2266_v29 }
 0x21a   :  { %1478 = vmatpush3.bf16.msra.mxu0 %v2268_v30 }
 0x21b   :  { %1494 = vmatprep.subr.bf16.mxu0 %v2180_v8 }
 0x2b8   :  { %v615_v6 = vpop.f32.mrf.mxu1 }
 0x2b9   :  { %v621_v14 = vadd.f32 %v615_v6, %v191_v5 }
 0x2ba   :  { %v1726_v22 = vpop.f32.mrf.mxu1 }
 0x2bb   :  { %1929 = vtanh.f32 %v621_v14 }
 0x2bc   :  { %v618_v24 = vpop.f32.mrf.mxu1 }
 0x2bd   :  { %v1448_v33 = vpop.f32.mrf.mxu0 }
 0x2be   :  { %v1727_v34 = vpop.f32.mrf.mxu1 }
 0x2bf   :  { %v1449_v35 = vpop.f32.mrf.mxu0 }
 0x2c0   :  { %v1450_v36 = vadd.f32 %v1449_v35, %v1448_v33 }
 0x2c1   :  { %v1451_v37 = vpop.f32.mrf.mxu0 }
 0x2c2   :  { %v575_v38 = vadd.f32 %v1450_v36, %v2329_v52 }
 0x2c3   :  { %v1452_v39 = vpop.f32.mrf.mxu0 }
 0x2c4   :  { %1931 = vtanh.f32 %v575_v38 }
 0x2c8   :  { %v1930_v40 = vpop.eup %1929 }
 0x2c9   :  { %v623_v41 = vpack.c.bf16 %v1930_v40, %v1930_v40 }
 0x2cb   :  { %1745 = vmatmul.mubr.bf16.vlgmr.msra.gmra.mxu1 %v623_v41 }
 0x2cc   :  { %1749 = vmatpush3.bf16.msra.mxu1 %v2155_v1  ;;  %1764 = vmatprep.mubr.msk.bf16.mxu1 %vm2070_vm0, %v2069_v0 }
 0x2cd   :  { %1750 = vmatprep.subr.bf16.mxu1 %v2069_v0 }
 0x2d0   :  { %1751 = vmatpush3.bf16.msra.mxu1 %v2158_v2 }
 0x2d1   :  { %v1932_v31 = vpop.eup %1931  ;;  %1752 = vmatprep.subr.bf16.mxu1 %v2069_v0 }
 0x2d2   :  { %v624_v43 = vpack.c.bf16 %v1932_v31, %v1932_v31  ;;  %v202_v31 = vadd.f32 %v2278_v32, %v2323_v47 }
 0x2d4   :  { %657 = vmatprep.mubr.bf16.mxu0 %v624_v43  ;;  %1753 = vmatpush3.bf16.msra.mxu1 %v2161_v3 }
 0x2d5   :  { %658 = vmatmul.mubr.bf16.vlgmr.msra.gmra.mxu0 %v623_v41  ;;  %1754 = vmatprep.subr.bf16.mxu1 %v2069_v0 }
 0x2d6   :  { %1495 = vmatpush3.bf16.msra.mxu0 %v2184_v10 }
 0x2d7   :  { %1496 = vmatprep.subr.bf16.mxu0 %v2222_v15 }
 0x2d8   :  { %1755 = vmatpush3.bf16.msra.mxu1 %v2176_v7 }
 0x2d9   :  { %1756 = vmatprep.subr.bf16.mxu1 %v2069_v0 }
 0x2da   :  { %1497 = vmatpush3.bf16.msra.mxu0 %v2225_v16 }
 0x2db   :  { %1498 = vmatprep.subr.bf16.mxu0 %v2228_v17 }
 0x2dc   :  { %1757 = vmatpush3.bf16.msra.mxu1 %v2182_v9 }
 0x2dd   :  { %1758 = vmatprep.subr.bf16.mxu1 %v2069_v0 }
 0x2de   :  { %1499 = vmatpush3.bf16.msra.mxu0 %v2231_v18 }
 0x2df   :  { %1500 = vmatprep.subr.bf16.mxu0 %v2233_v19 }
 0x2e0   :  { %1759 = vmatpush3.bf16.msra.mxu1 %v2190_v11 }
 0x2e1   :  { %1760 = vmatprep.subr.bf16.mxu1 %v2069_v0 }
 0x2e2   :  { %1501 = vmatpush3.bf16.msra.mxu0 %v2237_v20 }
 0x2e3   :  { %1502 = vmatprep.subr.bf16.mxu0 %v2240_v21 }
 0x2e4   :  { %1761 = vmatpush3.bf16.msra.mxu1 %v2194_v12 }
 0x2e5   :  { %1762 = vmatprep.subr.bf16.mxu1 %v2069_v0 }
 0x2e6   :  { %1503 = vmatpush3.bf16.msra.mxu0 %v2245_v23 }
 0x2e7   :  { %1504 = vmatprep.subr.bf16.mxu0 %v2254_v25 }
 0x2e8   :  { %1763 = vmatpush3.bf16.msra.mxu1 %v2198_v13 }
 0x2e9   :  { %1768 = vmatprep.subr.bf16.mxu1 %v2069_v0 }
 0x2ea   :  { %1505 = vmatpush3.bf16.msra.mxu0 %v2256_v26 }
 0x2eb   :  { %1506 = vmatprep.subr.bf16.mxu0 %v2260_v27 }
 0x2ee   :  { %1507 = vmatpush3.bf16.msra.mxu0 %v2262_v28 }
 0x2ef   :  { %1508 = vmatprep.subr.bf16.mxu0 %v2266_v29 }
 0x2f2   :  { %1509 = vmatpush3.bf16.msra.mxu0 %v2268_v30 }
 0x2f3   :  { %1525 = vmatprep.subr.bf16.mxu0 %v2180_v8 }
 0x38b   :  { %v700_v49 = vpop.f32.mrf.mxu1 }
 0x38c   :  { %v706_v50 = vadd.f32 %v700_v49, %v194_v48 }
 0x38d   :  { %v1746_v51 = vpop.f32.mrf.mxu1 }
 0x38e   :  { %1933 = vtanh.f32 %v706_v50 }
 0x38f   :  { %v703_v53 = vpop.f32.mrf.mxu1 }
 0x391   :  { %v1747_v54 = vpop.f32.mrf.mxu1 }
 0x395   :  { %v1479_v55 = vpop.f32.mrf.mxu0 }
 0x397   :  { %v1480_v56 = vpop.f32.mrf.mxu0 }
 0x398   :  { %v1481_v57 = vadd.f32 %v1480_v56, %v1479_v55 }
 0x399   :  { %v1482_v58 = vpop.f32.mrf.mxu0 }
 0x39a   :  { %v660_v59 = vadd.f32 %v1481_v57, %v2329_v52 }
 0x39b   :  { %v1934_v60 = vpop.eup %1933  ;;  %v1483_v61 = vpop.f32.mrf.mxu0 }
 0x39c   :  { %v708_v62 = vpack.c.bf16 %v1934_v60, %v1934_v60  ;;  %1935 = vtanh.f32 %v660_v59 }
 0x39e   :  { %1765 = vmatmul.mubr.bf16.vlgmr.msra.gmra.mxu1 %v708_v62 }
 0x39f   :  { %1769 = vmatpush3.bf16.msra.mxu1 %v2155_v1  ;;  %1784 = vmatprep.mubr.msk.bf16.mxu1 %vm2070_vm0, %v2069_v0 }
 0x3a0   :  { %1770 = vmatprep.subr.bf16.mxu1 %v2069_v0 }
 0x3a3   :  { %1771 = vmatpush3.bf16.msra.mxu1 %v2158_v2 }
 0x3a4   :  { %1772 = vmatprep.subr.bf16.mxu1 %v2069_v0 }
 0x3a7   :  { %1773 = vmatpush3.bf16.msra.mxu1 %v2161_v3 }
 0x3a8   :  { %1774 = vmatprep.subr.bf16.mxu1 %v2069_v0 }
 0x3a9   :  { %v1936_v42 = vpop.eup %1935 }
 0x3aa   :  { %v709_v63 = vpack.c.bf16 %v1936_v42, %v1936_v42 }
 0x3ab   :  { %1775 = vmatpush3.bf16.msra.mxu1 %v2176_v7 }
 0x3ac   :  { %742 = vmatprep.mubr.bf16.mxu0 %v709_v63  ;;  %1776 = vmatprep.subr.bf16.mxu1 %v2069_v0 }
 0x3ad   :  { %743 = vmatmul.mubr.bf16.vlgmr.msra.gmra.mxu0 %v708_v62 }
 0x3ae   :  { %1526 = vmatpush3.bf16.msra.mxu0 %v2184_v10 }
 0x3af   :  { %1777 = vmatpush3.bf16.msra.mxu1 %v2182_v9  ;;  %1527 = vmatprep.subr.bf16.mxu0 %v2222_v15 }
 0x3b0   :  { %1778 = vmatprep.subr.bf16.mxu1 %v2069_v0 }
 0x3b2   :  { %1528 = vmatpush3.bf16.msra.mxu0 %v2225_v16 }
 0x3b3   :  { %1779 = vmatpush3.bf16.msra.mxu1 %v2190_v11  ;;  %1529 = vmatprep.subr.bf16.mxu0 %v2228_v17 }
 0x3b4   :  { %1780 = vmatprep.subr.bf16.mxu1 %v2069_v0 }
 0x3b6   :  { %1530 = vmatpush3.bf16.msra.mxu0 %v2231_v18 }
 0x3b7   :  { %1781 = vmatpush3.bf16.msra.mxu1 %v2194_v12  ;;  %1531 = vmatprep.subr.bf16.mxu0 %v2233_v19 }
 0x3b8   :  { %1782 = vmatprep.subr.bf16.mxu1 %v2069_v0 }
 0x3ba   :  { %1532 = vmatpush3.bf16.msra.mxu0 %v2237_v20 }
 0x3bb   :  { %1783 = vmatpush3.bf16.msra.mxu1 %v2198_v13  ;;  %1533 = vmatprep.subr.bf16.mxu0 %v2240_v21 }
 0x3bc   :  { %1788 = vmatprep.subr.bf16.mxu1 %v2069_v0 }
 0x3be   :  { %1534 = vmatpush3.bf16.msra.mxu0 %v2245_v23 }
 0x3bf   :  { %1535 = vmatprep.subr.bf16.mxu0 %v2254_v25 }
 0x3c2   :  { %1536 = vmatpush3.bf16.msra.mxu0 %v2256_v26 }
 0x3c3   :  { %1537 = vmatprep.subr.bf16.mxu0 %v2260_v27 }
 0x3c6   :  { %1538 = vmatpush3.bf16.msra.mxu0 %v2262_v28 }
 0x3c7   :  { %1539 = vmatprep.subr.bf16.mxu0 %v2266_v29 }
 0x3ca   :  { %1540 = vmatpush3.bf16.msra.mxu0 %v2268_v30 }
 0x3cb   :  { %1556 = vmatprep.subr.bf16.mxu0 %v2180_v8 }
 0x45e   :  { %v785_v5 = vpop.f32.mrf.mxu1 }
 0x45f   :  { %v791_v6 = vadd.f32 %v785_v5, %v199_v4 }
 0x460   :  { %v1766_v14 = vpop.f32.mrf.mxu1 }
 0x461   :  { %1937 = vtanh.f32 %v791_v6 }
 0x462   :  { %v788_v22 = vpop.f32.mrf.mxu1 }
 0x464   :  { %v1767_v24 = vpop.f32.mrf.mxu1 }
 0x46d   :  { %v1510_v33 = vpop.f32.mrf.mxu0 }
 0x46e   :  { %v1938_v34 = vpop.eup %1937 }
 0x46f   :  { %v793_v35 = vpack.c.bf16 %v1938_v34, %v1938_v34  ;;  %v1511_v36 = vpop.f32.mrf.mxu0  ;;  %v1912_v34 = vld [vmem:[#allocation7 + $0x10] sm:$0xff]  }
 0x470   :  { %v1512_v37 = vadd.f32 %v1511_v36, %v1510_v33  ;;  %v1911_v33 = vld [vmem:[#allocation7 + $0x18] sm:$0xff]   ;;  %v1914_v36 = vld [vmem:[#allocation7] sm:$0xff]  }
 0x471   :  { %v1513_v38 = vpop.f32.mrf.mxu0  ;;  %1785 = vmatmul.mubr.bf16.vlgmr.msra.gmra.mxu1 %v793_v35 }
 0x472   :  { %v745_v39 = vadd.f32 %v1512_v37, %v2329_v52  ;;  %1789 = vmatpush3.bf16.msra.mxu1 %v2155_v1  ;;  %1804 = vmatprep.mubr.msk.bf16.mxu1 %vm2070_vm0, %v2069_v0  ;;  %v1915_v37 = vld [vmem:[#allocation8 + $0x38] sm:$0xff]   ;;  %v1916_v38 = vld [vmem:[#allocation8 + $0x30] sm:$0xff]  }
 0x473   :  { %v1514_v45 = vpop.f32.mrf.mxu0  ;;  %1790 = vmatprep.subr.bf16.mxu1 %v2069_v0 }
 0x474   :  { %1939 = vtanh.f32 %v745_v39  ;;  %v1917_v39 = vld [vmem:[#allocation8 + $0x28] sm:$0xff]   ;;  %v1918_v45 = vld [vmem:[#allocation8 + $0x20] sm:$0xff]  }
 0x476   :  { %1791 = vmatpush3.bf16.msra.mxu1 %v2158_v2 }
 0x477   :  { %1792 = vmatprep.subr.bf16.mxu1 %v2069_v0 }
 0x47a   :  { %1793 = vmatpush3.bf16.msra.mxu1 %v2161_v3 }
 0x47b   :  { %1794 = vmatprep.subr.bf16.mxu1 %v2069_v0 }
 0x47e   :  { %1795 = vmatpush3.bf16.msra.mxu1 %v2176_v7 }
 0x47f   :  { %1796 = vmatprep.subr.bf16.mxu1 %v2069_v0 }
 0x481   :  { %v1940_v40 = vpop.eup %1939 }
 0x482   :  { %v794_v41 = vpack.c.bf16 %v1940_v40, %v1940_v40  ;;  %1797 = vmatpush3.bf16.msra.mxu1 %v2182_v9  ;;  %v1919_v40 = vld [vmem:[#allocation8 + $0x18] sm:$0xff]  }
 0x483   :  { %1798 = vmatprep.subr.bf16.mxu1 %v2069_v0 }
 0x484   :  { %827 = vmatprep.mubr.bf16.mxu0 %v794_v41  ;;  %v1920_v41 = vld [vmem:[#allocation8 + $0x10] sm:$0xff]  }
 0x485   :  { %828 = vmatmul.mubr.bf16.vlgmr.msra.gmra.mxu0 %v793_v35  ;;  %v1913_v35 = vld [vmem:[#allocation7 + $0x8] sm:$0xff]  }
 0x486   :  { %1799 = vmatpush3.bf16.msra.mxu1 %v2190_v11  ;;  %1557 = vmatpush3.bf16.msra.mxu0 %v2184_v10 }
 0x487   :  { %1800 = vmatprep.subr.bf16.mxu1 %v2069_v0  ;;  %1558 = vmatprep.subr.bf16.mxu0 %v2222_v15 }
 0x48a   :  { %1801 = vmatpush3.bf16.msra.mxu1 %v2194_v12  ;;  %1559 = vmatpush3.bf16.msra.mxu0 %v2225_v16 }
 0x48b   :  { %1802 = vmatprep.subr.bf16.mxu1 %v2069_v0  ;;  %1560 = vmatprep.subr.bf16.mxu0 %v2228_v17 }
 0x48e   :  { %1803 = vmatpush3.bf16.msra.mxu1 %v2198_v13  ;;  %1561 = vmatpush3.bf16.msra.mxu0 %v2231_v18 }
 0x48f   :  { %1562 = vmatprep.subr.bf16.mxu0 %v2233_v19  ;;  %1808 = vmatprep.subr.bf16.mxu1 %v2069_v0 }
 0x492   :  { %1563 = vmatpush3.bf16.msra.mxu0 %v2237_v20 }
 0x493   :  { %1564 = vmatprep.subr.bf16.mxu0 %v2240_v21 }
 0x496   :  { %1565 = vmatpush3.bf16.msra.mxu0 %v2245_v23 }
 0x497   :  { %1566 = vmatprep.subr.bf16.mxu0 %v2254_v25 }
 0x49a   :  { %1567 = vmatpush3.bf16.msra.mxu0 %v2256_v26 }
 0x49b   :  { %1568 = vmatprep.subr.bf16.mxu0 %v2260_v27 }
 0x49e   :  { %1569 = vmatpush3.bf16.msra.mxu0 %v2262_v28 }
 0x49f   :  { %1570 = vmatprep.subr.bf16.mxu0 %v2266_v29 }
 0x4a2   :  { %1571 = vmatpush3.bf16.msra.mxu0 %v2268_v30 }
 0x4a3   :  { %1587 = vmatprep.subr.bf16.mxu0 %v2180_v8 }
 0x531   :  { %v870_v43 = vpop.f32.mrf.mxu1 }
 0x532   :  { %v876_v48 = vadd.f32 %v870_v43, %v202_v31 }
 0x533   :  { %v1786_v49 = vpop.f32.mrf.mxu1 }
 0x534   :  { %1941 = vtanh.f32 %v876_v48 }
 0x535   :  { %v873_v50 = vpop.f32.mrf.mxu1 }
 0x537   :  { %v1787_v51 = vpop.f32.mrf.mxu1 }
 0x541   :  { %v1942_v53 = vpop.eup %1941 }
 0x542   :  { %v878_v54 = vpack.c.bf16 %v1942_v53, %v1942_v53 }
 0x544   :  { %1805 = vmatmul.mubr.bf16.vlgmr.msra.gmra.mxu1 %v878_v54 }
 0x545   :  { %v1541_v55 = vpop.f32.mrf.mxu0  ;;  %1809 = vmatpush3.bf16.msra.mxu1 %v2155_v1  ;;  %1824 = vmatprep.mubr.msk.bf16.mxu1 %vm2070_vm0, %v2069_v0 }
 0x546   :  { %1810 = vmatprep.subr.bf16.mxu1 %v2069_v0 }
 0x547   :  { %v1542_v56 = vpop.f32.mrf.mxu0 }
 0x548   :  { %v1543_v57 = vadd.f32 %v1542_v56, %v1541_v55  ;;  %v1921_v55 = vld [vmem:[#allocation8 + $0x8] sm:$0xff]   ;;  %v1922_v56 = vld [vmem:[#allocation8] sm:$0xff]  }
 0x549   :  { %v1544_v47 = vpop.f32.mrf.mxu0  ;;  %1811 = vmatpush3.bf16.msra.mxu1 %v2158_v2 }
 0x54a   :  { %v830_v58 = vadd.f32 %v1543_v57, %v2329_v52  ;;  %1812 = vmatprep.subr.bf16.mxu1 %v2069_v0  ;;  %v1369_v57 = vld [vmem:[%s2571_s7] ss:$0 sm:$0xff]  ;;  %s2035_s7 = scalar_lea.vmem %s1324_s26, 128 }
 0x54b   :  { %v1545_v59 = vpop.f32.mrf.mxu0  ;;  %p2036_p6 = scmp.ne.s32.totalorder %s1324_s26, %s2035_s7  ;;  %p2041_p8 = scmp.lt.s32.totalorder %s2035_s7, %s2035_s7 }
 0x54c   :  { %1943 = vtanh.f32 %v830_v58 }
 0x54d   :  { %1813 = vmatpush3.bf16.msra.mxu1 %v2161_v3  ;;  %v207_v3 = vadd.f32 %v2317_v44, %v2278_v32  ;;  %p2042_p9 = por %p2041_p8, %p2040_p7 }
 0x54e   :  { %1814 = vmatprep.subr.bf16.mxu1 %v2069_v0 }
 0x54f   :  { %p2043_p10 = pnand %p2042_p9, %p2036_p6 }
 0x551   :  { %1815 = vmatpush3.bf16.msra.mxu1 %v2176_v7 }
 0x552   :  { %1816 = vmatprep.subr.bf16.mxu1 %v2069_v0 }
 0x555   :  { %1817 = vmatpush3.bf16.msra.mxu1 %v2182_v9 }
 0x556   :  { %1818 = vmatprep.subr.bf16.mxu1 %v2069_v0 }
 0x559   :  { %v1944_v1 = vpop.eup %1943  ;;  %1819 = vmatpush3.bf16.msra.mxu1 %v2190_v11 }
 0x55a   :  { %v879_v2 = vpack.c.bf16 %v1944_v1, %v1944_v1  ;;  %1820 = vmatprep.subr.bf16.mxu1 %v2069_v0 }
 0x55c   :  { %912 = vmatprep.mubr.bf16.mxu0 %v879_v2 }
 0x55d   :  { %913 = vmatmul.mubr.bf16.vlgmr.msra.gmra.mxu0 %v878_v54  ;;  %1821 = vmatpush3.bf16.msra.mxu1 %v2194_v12 }
 0x55e   :  { %1822 = vmatprep.subr.bf16.mxu1 %v2069_v0  ;;  %1588 = vmatpush3.bf16.msra.mxu0 %v2184_v10 }
 0x55f   :  { %1589 = vmatprep.subr.bf16.mxu0 %v2222_v15 }
 0x561   :  { %1823 = vmatpush3.bf16.msra.mxu1 %v2198_v13 }
 0x562   :  { %1590 = vmatpush3.bf16.msra.mxu0 %v2225_v16  ;;  %1828 = vmatprep.subr.bf16.mxu1 %v2069_v0 }
 0x563   :  { %1591 = vmatprep.subr.bf16.mxu0 %v2228_v17 }
 0x566   :  { %1592 = vmatpush3.bf16.msra.mxu0 %v2231_v18 }
 0x567   :  { %1593 = vmatprep.subr.bf16.mxu0 %v2233_v19 }
 0x56a   :  { %1594 = vmatpush3.bf16.msra.mxu0 %v2237_v20 }
 0x56b   :  { %1595 = vmatprep.subr.bf16.mxu0 %v2240_v21 }
 0x56e   :  { %1596 = vmatpush3.bf16.msra.mxu0 %v2245_v23 }
 0x56f   :  { %1597 = vmatprep.subr.bf16.mxu0 %v2254_v25 }
 0x572   :  { %1598 = vmatpush3.bf16.msra.mxu0 %v2256_v26 }
 0x573   :  { %1599 = vmatprep.subr.bf16.mxu0 %v2260_v27 }
 0x576   :  { %1600 = vmatpush3.bf16.msra.mxu0 %v2262_v28 }
 0x577   :  { %1601 = vmatprep.subr.bf16.mxu0 %v2266_v29 }
 0x57a   :  { %1602 = vmatpush3.bf16.msra.mxu0 %v2268_v30 }
 0x57b   :  { %1618 = vmatprep.subr.bf16.mxu0 %v2180_v8 }
 0x604   :  { %v955_v7 = vpop.f32.mrf.mxu1 }
 0x605   :  { %v961_v9 = vadd.f32 %v955_v7, %v207_v3  ;;  %v1378_v7 = vld [vmem:[%s2573_s9] ss:$0 sm:$0xff] }
 0x606   :  { %v1806_v11 = vpop.f32.mrf.mxu1 }
 0x607   :  { %1945 = vtanh.f32 %v961_v9 }
 0x608   :  { %v958_v12 = vpop.f32.mrf.mxu1 }
 0x60a   :  { %v1807_v13 = vpop.f32.mrf.mxu1 }
 0x614   :  { %v1946_v60 = vpop.eup %1945 }
 0x615   :  { %v963_v61 = vpack.c.bf16 %v1946_v60, %v1946_v60 }
 0x617   :  { %1825 = vmatmul.mubr.bf16.vlgmr.msra.gmra.mxu1 %v963_v61 }
 0x618   :  { %1844 = vmatprep.mubr.msk.bf16.mxu1 %vm2070_vm0, %v2069_v0 }
 0x61d   :  { %v1572_v62 = vpop.f32.mrf.mxu0 }
 0x61f   :  { %v1573_v42 = vpop.f32.mrf.mxu0 }
 0x620   :  { %v1574_v63 = vadd.f32 %v1573_v42, %v1572_v62 }
 0x621   :  { %v1575_v4 = vpop.f32.mrf.mxu0 }
 0x622   :  { %v915_v8 = vadd.f32 %v1574_v63, %v2329_v52 }
 0x623   :  { %v1576_v5 = vpop.f32.mrf.mxu0 }
 0x624   :  { %1947 = vtanh.f32 %v915_v8 }
 0x631   :  { %v1948_v44 = vpop.eup %1947 }
 0x632   :  { %v964_v6 = vpack.c.bf16 %v1948_v44, %v1948_v44 }
 0x634   :  { %997 = vmatprep.mubr.bf16.mxu0 %v964_v6 }
 0x635   :  { %998 = vmatmul.mubr.bf16.vlgmr.msra.gmra.mxu0 %v963_v61 }
 0x636   :  { %1619 = vmatpush3.bf16.msra.mxu0 %v2184_v10  ;;  %v1907_v10 = vld [vmem:[#allocation7 + $0x38] sm:$0xff]  }
 0x637   :  { %1620 = vmatprep.subr.bf16.mxu0 %v2222_v15  ;;  %1829 = vmatpush3.bf16.msra.mxu1 %v1907_v10  ;;  %v1908_v15 = vld [vmem:[#allocation7 + $0x30] sm:$0xff]  }
 0x638   :  { %1830 = vmatprep.subr.bf16.mxu1 %v2069_v0 }
 0x63a   :  { %1621 = vmatpush3.bf16.msra.mxu0 %v2225_v16 }
 0x63b   :  { %1622 = vmatprep.subr.bf16.mxu0 %v2228_v17  ;;  %1831 = vmatpush3.bf16.msra.mxu1 %v1908_v15 }
 0x63c   :  { %1832 = vmatprep.subr.bf16.mxu1 %v2069_v0 }
 0x63e   :  { %1623 = vmatpush3.bf16.msra.mxu0 %v2231_v18 }
 0x63f   :  { %1624 = vmatprep.subr.bf16.mxu0 %v2233_v19 }
 0x642   :  { %1625 = vmatpush3.bf16.msra.mxu0 %v2237_v20  ;;  %v210_v20 = vadd.f32 %v2321_v46, %v2278_v32  ;;  %v1909_v32 = vld [vmem:[#allocation7 + $0x28] sm:$0xff]   ;;  %v1910_v46 = vld [vmem:[#allocation7 + $0x20] sm:$0xff]  }
 0x643   :  { %1626 = vmatprep.subr.bf16.mxu0 %v2240_v21  ;;  %1833 = vmatpush3.bf16.msra.mxu1 %v1909_v32 }
 0x644   :  { %1834 = vmatprep.subr.bf16.mxu1 %v2069_v0 }
 0x646   :  { %1627 = vmatpush3.bf16.msra.mxu0 %v2245_v23 }
 0x647   :  { %1628 = vmatprep.subr.bf16.mxu0 %v2254_v25  ;;  %1835 = vmatpush3.bf16.msra.mxu1 %v1910_v46 }
 0x648   :  { %1836 = vmatprep.subr.bf16.mxu1 %v2069_v0 }
 0x64a   :  { %1629 = vmatpush3.bf16.msra.mxu0 %v2256_v26 }
 0x64b   :  { %1630 = vmatprep.subr.bf16.mxu0 %v2260_v27  ;;  %1837 = vmatpush3.bf16.msra.mxu1 %v1911_v33 }
 0x64c   :  { %1838 = vmatprep.subr.bf16.mxu1 %v2069_v0 }
 0x64e   :  { %1631 = vmatpush3.bf16.msra.mxu0 %v2262_v28 }
 0x64f   :  { %1632 = vmatprep.subr.bf16.mxu0 %v2266_v29  ;;  %1839 = vmatpush3.bf16.msra.mxu1 %v1912_v34 }
 0x650   :  { %1840 = vmatprep.subr.bf16.mxu1 %v2069_v0 }
 0x652   :  { %1633 = vmatpush3.bf16.msra.mxu0 %v2268_v30 }
 0x653   :  { %1848 = vmatprep.subr.bf16.mxu0 %v2069_v0  ;;  %1841 = vmatpush3.bf16.msra.mxu1 %v1913_v35 }
 0x654   :  { %1842 = vmatprep.subr.bf16.mxu1 %v2069_v0 }
 0x657   :  { %1843 = vmatpush3.bf16.msra.mxu1 %v1914_v36 }
 0x6d7   :  { %v1040_v16 = vpop.f32.mrf.mxu1 }
 0x6d8   :  { %v1046_v23 = vadd.f32 %v1040_v16, %v210_v20 }
 0x6d9   :  { %v1826_v17 = vpop.f32.mrf.mxu1 }
 0x6da   :  { %1949 = vtanh.f32 %v1046_v23 }
 0x6db   :  { %v1043_v18 = vpop.f32.mrf.mxu1 }
 0x6dd   :  { %v1827_v19 = vpop.f32.mrf.mxu1 }
 0x6e7   :  { %v1950_v30 = vpop.eup %1949 }
 0x6e8   :  { %v1048_v24 = vpack.c.bf16 %v1950_v30, %v1950_v30 }
 0x6f5   :  { %v1603_v21 = vpop.f32.mrf.mxu0 }
 0x6f7   :  { %v1604_v25 = vpop.f32.mrf.mxu0 }
 0x6f8   :  { %v1605_v26 = vadd.f32 %v1604_v25, %v1603_v21 }
 0x6f9   :  { %v1606_v27 = vpop.f32.mrf.mxu0 }
 0x6fa   :  { %v1000_v28 = vadd.f32 %v1605_v26, %v2329_v52 }
 0x6fb   :  { %v1607_v29 = vpop.f32.mrf.mxu0 }
 0x6fc   :  { %1951 = vtanh.f32 %v1000_v28 }
 0x709   :  { %v1952_v14 = vpop.eup %1951 }
 0x70a   :  { %v1049_v22 = vpack.c.bf16 %v1952_v14, %v1952_v14 }
 0x70c   :  { %1082 = vmatprep.mubr.bf16.mxu0 %v1049_v22 }
 0x70d   :  { %1083 = vmatmul.mubr.bf16.vlgmr.msra.gmra.mxu0 %v1048_v24 }
 0x70e   :  { %1864 = vmatprep.mubr.msk.bf16.mxu0 %vm2070_vm0, %v2069_v0  ;;  %1849 = vmatpush3.bf16.msra.mxu0 %v1915_v37 }
 0x70f   :  { %1850 = vmatprep.subr.bf16.mxu0 %v2069_v0 }
 0x712   :  { %1851 = vmatpush3.bf16.msra.mxu0 %v1916_v38 }
 0x713   :  { %1852 = vmatprep.subr.bf16.mxu0 %v2069_v0 }
 0x716   :  { %1853 = vmatpush3.bf16.msra.mxu0 %v1917_v39 }
 0x717   :  { %1854 = vmatprep.subr.bf16.mxu0 %v2069_v0 }
 0x71a   :  { %1855 = vmatpush3.bf16.msra.mxu0 %v1918_v45 }
 0x71b   :  { %1856 = vmatprep.subr.bf16.mxu0 %v2069_v0 }
 0x71e   :  { %1857 = vmatpush3.bf16.msra.mxu0 %v1919_v40 }
 0x71f   :  { %1858 = vmatprep.subr.bf16.mxu0 %v2069_v0 }
 0x722   :  { %1859 = vmatpush3.bf16.msra.mxu0 %v1920_v41 }
 0x723   :  { %1860 = vmatprep.subr.bf16.mxu0 %v2069_v0 }
 0x726   :  { %1861 = vmatpush3.bf16.msra.mxu0 %v1921_v55 }
 0x727   :  { %1862 = vmatprep.subr.bf16.mxu0 %v2069_v0 }
 0x72a   :  { %1863 = vmatpush3.bf16.msra.mxu0 %v1922_v56 }
 0x7cd   :  { %v1634_v31 = vpop.f32.mrf.mxu0 }
 0x7cf   :  { %v1635_v43 = vpop.f32.mrf.mxu0 }
 0x7d0   :  { %v1636_v48 = vadd.f32 %v1635_v43, %v1634_v31 }
 0x7d1   :  { %v1637_v49 = vpop.f32.mrf.mxu0 }
 0x7d2   :  { %v1085_v50 = vadd.f32 %v1636_v48, %v2329_v52 }
 0x7d3   :  { %v1638_v51 = vpop.f32.mrf.mxu0 }
 0x7d4   :  { %1953 = vtanh.f32 %v1085_v50 }
 0x7e1   :  { %v1954_v53 = vpop.eup %1953 }
 0x7e2   :  { %v1091_v54 = vpack.c.bf16 %v1954_v53, %v1954_v53 }
 0x7e4   :  { %1845 = vmatmul.mubr.bf16.vlgmr.msra.gmra.mxu1 %v1091_v54 }
 0x8a4   :  { %v1197_v47 = vpop.f32.mrf.mxu1 }
 0x8a5   :  { %v1198_v58 = vadd.f32 %v1369_v57, %v1197_v47 }
 0x8a6   :  { %v1846_v59 = vpop.f32.mrf.mxu1 }
 0x8a7   :  { %v1203_v1 = vmax.f32 %v1198_v58, 0.0 }
 0x8a8   :  { %v1200_v52 = vpop.f32.mrf.mxu1 }
 0x8a9   :  { %v1204_v2 = vpack.c.bf16 %v1203_v1, %v1203_v1 }
 0x8aa   :  { %v1847_v3 = vpop.f32.mrf.mxu1 }
 0x8ab   :  { %1865 = vmatmul.mubr.bf16.vlgmr.msra.gmra.mxu0 %v1204_v2 }
 0x96b   :  { %v1310_v0 = vpop.f32.mrf.mxu0 }
 0x96c   :  { %v1311_v9 = vadd.f32 %v1378_v7, %v1310_v0 }
 0x96d   :  { %v1866_v11 = vpop.f32.mrf.mxu0 }
 0x96e   :  { %1316 = vst [vmem:[#allocation10] sm:$0xff] %v1311_v9 }
 0x96f   :  { %v1313_v12 = vpop.f32.mrf.mxu0 }
 0x970   :  { %2046 = shalt.err (!%p2043_p10)
}
 0x971   :  { %1326 = dma.vmem_to_hbm [thread:$0]  %s1324_s26, 128, %s2574_s10, [#allocation4]   ;;  %v1867_v13 = vpop.f32.mrf.mxu0 }
 0x972   :  { %2061 = dma.done.wait [#allocation4], 128  }
 0x973   :  { %2062 = vsyncadd [#allocation4], 4294967168 }
 0x974   :  { %1330 = vsyncpa [#allocation3], 1 }
 0x975   :  { %1331 = vsyncpa [#allocation6], 1 }
 0x976   :  { %1332 = vsyncpa [#allocation9], 1 }
 0x977   :  { %1333 = vsyncpa [#allocation4], 1 }

</bundles_post_ra>
